<compile_context>
chip_gen: v7x
topology: tpu7x:2x2x1
jax: 0.10.0
libtpu: 0.0.40
codegen_flags: <defaults>
</compile_context>

<pallas_src>
import math
import functools

import jax
import jax.numpy as jnp
from jax.experimental import pallas as pl
from jax.experimental.pallas import tpu as pltpu


def _region_fusion_kernel(src_ref, wslab_ref, l2w_ref, vec_ref,   # inputs
                          out_ref,                                 # output
                          ctx_ref,                                 # VMEM scratch (N, D) f32
                          *, nhead, batch, eps=1e-5):
    N, D = src_ref.shape
    FF = l2w_ref.shape[0]
    S = N // batch
    hd = D // nhead
    scale = 1.0 / math.sqrt(hd)

    x0 = src_ref[...].astype(jnp.float32)          # (N, D), N = B*S rows
    wslab = wslab_ref[...].astype(jnp.float32)     # (D, 3D | D | FF) packed along lanes
    vecs = vec_ref[...].astype(jnp.float32)        # (8, lane_w) packed bias/LN vectors

    in_w = wslab[:, :3 * D]                        # (D, 3D)   attention in-projection
    out_w = wslab[:, 3 * D:4 * D]                  # (D, D)    attention out-projection
    l1_w = wslab[:, 4 * D:4 * D + FF]              # (D, FF)   linear1
    l2_w = l2w_ref[...].astype(jnp.float32)        # (FF, D)   linear2

    in_b = vecs[0:1, :3 * D]
    out_b = vecs[1:2, :D]
    l1_b = vecs[2:3, :FF]
    l2_b = vecs[3:4, :D]
    g1, b1 = vecs[4:5, :D], vecs[5:6, :D]
    g2, b2 = vecs[6:7, :D], vecs[7:8, :D]

    # ---------- multi-head self attention ----------
    # single (N, D) @ (D, 3D) projection for all of Q, K, V
    qkv = jnp.dot(x0, in_w, preferred_element_type=jnp.float32) + in_b
    q, k, v = qkv[:, :D], qkv[:, D:2 * D], qkv[:, 2 * D:]

    # per-head, batched over B via one dot_general; context written into lane slices
    # of the VMEM scratch (no concatenate / cross-lane relayout).
    for h in range(nhead):
        lo, hi = h * hd, (h + 1) * hd
        qh = q[:, lo:hi].reshape(batch, S, hd)
        kh = k[:, lo:hi].reshape(batch, S, hd)
        vh = v[:, lo:hi].reshape(batch, S, hd)
        s = jnp.einsum("bqd,bkd->bqk", qh, kh,
                       preferred_element_type=jnp.float32) * scale     # (B, S, S)
        s = s - jnp.max(s, axis=-1, keepdims=True)
        p = jnp.exp(s)
        # divide -> EUP approx reciprocal (free bundle slot) instead of VALU divide
        a = p * pl.reciprocal(jnp.sum(p, axis=-1, keepdims=True), approx=True)
        ctx_h = jnp.einsum("bqk,bkd->bqd", a, vh,
                           preferred_element_type=jnp.float32)         # (B, S, hd)
        ctx_ref[:, lo:hi] = ctx_h.reshape(N, hd)

    ctx = ctx_ref[...]
    attn = jnp.dot(ctx, out_w, preferred_element_type=jnp.float32) + out_b

    # ---------- residual + LayerNorm 1 (dropout1 = identity in eval) ----------
    x = x0 + attn
    mu = jnp.mean(x, axis=-1, keepdims=True)
    var = jnp.mean((x - mu) ** 2, axis=-1, keepdims=True)
    x = (x - mu) * jax.lax.rsqrt(var + eps) * g1 + b1

    # ---------- feed-forward ----------
    h1 = jnp.maximum(jnp.dot(x, l1_w, preferred_element_type=jnp.float32) + l1_b, 0.0)
    ff = jnp.dot(h1, l2_w, preferred_element_type=jnp.float32) + l2_b

    # ---------- residual + LayerNorm 2 ----------
    y = x + ff
    mu2 = jnp.mean(y, axis=-1, keepdims=True)
    var2 = jnp.mean((y - mu2) ** 2, axis=-1, keepdims=True)
    y = (y - mu2) * jax.lax.rsqrt(var2 + eps) * g2 + b2

    out_ref[...] = y.astype(out_ref.dtype)


def region_fusion_block(src, params, *, nhead):
    B, S, D = src.shape
    FF = params["l1_w_t"].shape[1]
    assert D % nhead == 0, "input_dim must be divisible by nhead"
    N = B * S

    # ---- wrapper-side parameter packing (pure XLA, negligible cost) ----
    # weight slab: in_proj | out_proj | linear1, concatenated along lanes
    wslab = jnp.concatenate(
        [params["in_w_t"], params["out_w_t"], params["l1_w_t"]], axis=1)  # (D, 4D+FF)
    l2_w = params["l2_w_t"]                                               # (FF, D)

    lane_w = 128 * pl.cdiv(max(3 * D, FF, D), 128)

    def row(v):
        v = jnp.asarray(v, jnp.float32).reshape(-1)
        return jnp.pad(v, (0, lane_w - v.shape[0]))[None, :]

    vecs = jnp.concatenate(
        [row(params["in_b"]), row(params["out_b"]),
         row(params["l1_b"]), row(params["l2_b"]),
         row(params["n1_g"]), row(params["n1_b"]),
         row(params["n2_g"]), row(params["n2_b"])], axis=0)               # (8, lane_w)

    # fold batch into rows: the whole problem is one grid step
    src2d = src.reshape(N, D)

    kernel = functools.partial(_region_fusion_kernel, nhead=nhead, batch=B)

    out2d = pl.pallas_call(
        kernel,
        out_shape=jax.ShapeDtypeStruct((N, D), src.dtype),
        grid=(1,),
        in_specs=[
            pl.BlockSpec((N, D), lambda i: (0, 0)),
            pl.BlockSpec(wslab.shape, lambda i: (0, 0)),
            pl.BlockSpec(l2_w.shape, lambda i: (0, 0)),
            pl.BlockSpec(vecs.shape, lambda i: (0, 0)),
        ],
        out_specs=pl.BlockSpec((N, D), lambda i: (0, 0)),
        scratch_shapes=[pltpu.VMEM((N, D), jnp.float32)],
        compiler_params=pltpu.CompilerParams(dimension_semantics=("arbitrary",)),
    )(src2d, wslab, l2_w, vecs)

    return out2d.reshape(B, S, D)


# ---------------- pure-JAX reference (mirrors the PyTorch forward, eval mode) ----------------
def _layernorm(x, g, b, eps=1e-5):
    mu = x.mean(-1, keepdims=True)
    var = ((x - mu) ** 2).mean(-1, keepdims=True)
    return (x - mu) * jax.lax.rsqrt(var + eps) * g + b


def reference(src, params, *, nhead):
    B, S, D = src.shape
    hd = D // nhead
    qkv = src @ params["in_w_t"] + params["in_b"]
    q, k, v = qkv[..., :D], qkv[..., D:2 * D], qkv[..., 2 * D:]
    split = lambda t: t.reshape(B, S, nhead, hd).transpose(0, 2, 1, 3)
    qh, kh, vh = split(q), split(k), split(v)
    s = jnp.einsum("bhqd,bhkd->bhqk", qh, kh) / math.sqrt(hd)
    a = jax.nn.softmax(s, axis=-1)
    ctx = jnp.einsum("bhqk,bhkd->bhqd", a, vh).transpose(0, 2, 1, 3).reshape(B, S, D)
    src2 = ctx @ params["out_w_t"] + params["out_b"]
    x = _layernorm(src + src2, params["n1_g"], params["n1_b"])
    ff = jnp.maximum(x @ params["l1_w_t"] + params["l1_b"], 0.0) @ params["l2_w_t"] + params["l2_b"]
    return _layernorm(x + ff, params["n2_g"], params["n2_b"])


def init_params(key, D, FF):
    ks = jax.random.split(key, 8)
    f = jnp.float32
    return {
        # nn.MultiheadAttention: in_proj (3D, D) / out_proj (D, D), stored pre-transposed
        "in_w_t": (jax.random.normal(ks[0], (D, 3 * D)) * 0.1).astype(f),
        "in_b":   (jax.random.normal(ks[1], (3 * D,)) * 0.01).astype(f),
        "out_w_t": (jax.random.normal(ks[2], (D, D)) * 0.1).astype(f),
        "out_b":  (jax.random.normal(ks[3], (D,)) * 0.01).astype(f),
        # feed-forward
        "l1_w_t": (jax.random.normal(ks[4], (D, FF)) * 0.1).astype(f),
        "l1_b":   (jax.random.normal(ks[5], (FF,)) * 0.01).astype(f),
        "l2_w_t": (jax.random.normal(ks[6], (FF, D)) * 0.1).astype(f),
        "l2_b":   (jax.random.normal(ks[7], (D,)) * 0.01).astype(f),
        # LayerNorms
        "n1_g": jnp.ones((D,), f), "n1_b": jnp.zeros((D,), f),
        "n2_g": jnp.ones((D,), f), "n2_b": jnp.zeros((D,), f),
    }


if __name__ == "__main__":
    # RegionFusionBlock(input_dim=32, nhead=4, dropout=0.1, dim_feedforward=64), eval mode
    B, S, D = 2, 8, 32
    nhead, FF = 4, 64

    key = jax.random.PRNGKey(0)
    k_src, k_par = jax.random.split(key)
    src = jax.random.normal(k_src, (B, S, D), dtype=jnp.float32)
    params = init_params(k_par, D, FF)

    out = region_fusion_block(src, params, nhead=nhead)
    out = jax.block_until_ready(out)

    ref = reference(src, params, nhead=nhead)
    assert out.shape == (B, S, D)
    assert jnp.allclose(out, ref, atol=2e-3, rtol=2e-3), \
        f"max abs err = {jnp.max(jnp.abs(out - ref))}"

    print("KERNEL_OK")
</pallas_src>

<mosaic_0001>
module attributes {stable_mosaic.version = 11 : i64} {
  func.func @_region_fusion_kernel(%arg0: i32, %arg1: memref<16x32xf32, #tpu.memory_space<vmem>>, %arg2: memref<32x192xf32, #tpu.memory_space<vmem>>, %arg3: memref<64x32xf32, #tpu.memory_space<vmem>>, %arg4: memref<8x128xf32, #tpu.memory_space<vmem>>, %arg5: memref<16x32xf32, #tpu.memory_space<vmem>>, %arg6: memref<16x32xf32, #tpu.memory_space<vmem>>) attributes {dimension_semantics = [#tpu.dimension_semantics<arbitrary>], iteration_bounds = array<i64: 1>, scalar_prefetch = 0 : i64, scratch_operands = 1 : i64, tpu.core_type = #tpu.core_type<tc>, window_params = [{pipeline_mode = #tpu.pipeline_mode<synchronous>, transform_indices = @transform_0, window_bounds = array<i64: 16, 32>}, {pipeline_mode = #tpu.pipeline_mode<synchronous>, transform_indices = @transform_1, window_bounds = array<i64: 32, 192>}, {pipeline_mode = #tpu.pipeline_mode<synchronous>, transform_indices = @transform_2, window_bounds = array<i64: 64, 32>}, {pipeline_mode = #tpu.pipeline_mode<synchronous>, transform_indices = @transform_3, window_bounds = array<i64: 8, 128>}, {pipeline_mode = #tpu.pipeline_mode<synchronous>, transform_indices = @transform_4, window_bounds = array<i64: 16, 32>}]} {
    %c0 = arith.constant 0 : index
    %c0_0 = arith.constant 0 : index
    %0 = vector.load %arg1[%c0, %c0_0] : memref<16x32xf32, #tpu.memory_space<vmem>>, vector<16x32xf32>
    %c0_1 = arith.constant 0 : index
    %c0_2 = arith.constant 0 : index
    %1 = vector.load %arg2[%c0_1, %c0_2] : memref<32x192xf32, #tpu.memory_space<vmem>>, vector<32x192xf32>
    %c0_3 = arith.constant 0 : index
    %c0_4 = arith.constant 0 : index
    %2 = vector.load %arg4[%c0_3, %c0_4] : memref<8x128xf32, #tpu.memory_space<vmem>>, vector<8x128xf32>
    %3 = vector.extract_strided_slice %1 {offsets = [0, 0], sizes = [32, 96], strides = [1, 1]} : vector<32x192xf32> to vector<32x96xf32>
    %4 = vector.extract_strided_slice %1 {offsets = [0, 96], sizes = [32, 32], strides = [1, 1]} : vector<32x192xf32> to vector<32x32xf32>
    %5 = vector.extract_strided_slice %1 {offsets = [0, 128], sizes = [32, 64], strides = [1, 1]} : vector<32x192xf32> to vector<32x64xf32>
    %c0_5 = arith.constant 0 : index
    %c0_6 = arith.constant 0 : index
    %6 = vector.load %arg3[%c0_5, %c0_6] : memref<64x32xf32, #tpu.memory_space<vmem>>, vector<64x32xf32>
    %7 = vector.extract_strided_slice %2 {offsets = [0, 0], sizes = [1, 96], strides = [1, 1]} : vector<8x128xf32> to vector<1x96xf32>
    %8 = vector.extract_strided_slice %2 {offsets = [1, 0], sizes = [1, 32], strides = [1, 1]} : vector<8x128xf32> to vector<1x32xf32>
    %9 = vector.extract_strided_slice %2 {offsets = [2, 0], sizes = [1, 64], strides = [1, 1]} : vector<8x128xf32> to vector<1x64xf32>
    %10 = vector.extract_strided_slice %2 {offsets = [3, 0], sizes = [1, 32], strides = [1, 1]} : vector<8x128xf32> to vector<1x32xf32>
    %11 = vector.extract_strided_slice %2 {offsets = [4, 0], sizes = [1, 32], strides = [1, 1]} : vector<8x128xf32> to vector<1x32xf32>
    %12 = vector.extract_strided_slice %2 {offsets = [5, 0], sizes = [1, 32], strides = [1, 1]} : vector<8x128xf32> to vector<1x32xf32>
    %13 = vector.extract_strided_slice %2 {offsets = [6, 0], sizes = [1, 32], strides = [1, 1]} : vector<8x128xf32> to vector<1x32xf32>
    %14 = vector.extract_strided_slice %2 {offsets = [7, 0], sizes = [1, 32], strides = [1, 1]} : vector<8x128xf32> to vector<1x32xf32>
    %cst = arith.constant dense<0.000000e+00> : vector<16x96xf32>
    %15 = tpu.matmul %0, %3, %cst {dimension_numbers = #tpu.dot_dimension_numbers<[1], [0], [0], [1], [0, 0, 1, 1], [], []>} : vector<16x32xf32>, vector<32x96xf32>, vector<16x96xf32> -> vector<16x96xf32>
    %16 = vector.broadcast %7 : vector<1x96xf32> to vector<16x96xf32>
    %17 = arith.addf %15, %16 : vector<16x96xf32>
    %18 = vector.extract_strided_slice %17 {offsets = [0, 0], sizes = [16, 32], strides = [1, 1]} : vector<16x96xf32> to vector<16x32xf32>
    %19 = vector.extract_strided_slice %17 {offsets = [0, 32], sizes = [16, 32], strides = [1, 1]} : vector<16x96xf32> to vector<16x32xf32>
    %20 = vector.extract_strided_slice %17 {offsets = [0, 64], sizes = [16, 32], strides = [1, 1]} : vector<16x96xf32> to vector<16x32xf32>
    %21 = vector.extract_strided_slice %18 {offsets = [0, 0], sizes = [16, 8], strides = [1, 1]} : vector<16x32xf32> to vector<16x8xf32>
    %22 = vector.shape_cast %21 : vector<16x8xf32> to vector<2x8x8xf32>
    %23 = vector.extract_strided_slice %19 {offsets = [0, 0], sizes = [16, 8], strides = [1, 1]} : vector<16x32xf32> to vector<16x8xf32>
    %24 = vector.shape_cast %23 : vector<16x8xf32> to vector<2x8x8xf32>
    %25 = vector.extract_strided_slice %20 {offsets = [0, 0], sizes = [16, 8], strides = [1, 1]} : vector<16x32xf32> to vector<16x8xf32>
    %26 = vector.shape_cast %25 : vector<16x8xf32> to vector<2x8x8xf32>
    "tpu.trace_start"() <{level = 10 : i32, message = "bqd,bkd->bqk"}> : () -> ()
    %cst_7 = arith.constant dense<0.000000e+00> : vector<2x8x8xf32>
    %27 = tpu.matmul %22, %24, %cst_7 {dimension_numbers = #tpu.dot_dimension_numbers<[2], [2], [1], [1], [0, 0, 0, 1, 1, 1], [0], [0]>} : vector<2x8x8xf32>, vector<2x8x8xf32>, vector<2x8x8xf32> -> vector<2x8x8xf32>
    "tpu.trace_stop"() : () -> ()
    %cst_8 = arith.constant 0.353553385 : f32
    %28 = vector.broadcast %cst_8 : f32 to vector<2x8x8xf32>
    %29 = arith.mulf %27, %28 : vector<2x8x8xf32>
    %cst_9 = arith.constant dense<0xFF800000> : vector<2x8xf32>
    %30 = vector.multi_reduction <maximumf>, %29, %cst_9 [2] : vector<2x8x8xf32> to vector<2x8xf32>
    %31 = vector.shape_cast %30 : vector<2x8xf32> to vector<2x8x1xf32>
    %32 = vector.broadcast %31 : vector<2x8x1xf32> to vector<2x8x8xf32>
    %33 = arith.subf %29, %32 : vector<2x8x8xf32>
    %34 = math.exp %33 : vector<2x8x8xf32>
    %cst_10 = arith.constant dense<0.000000e+00> : vector<2x8xf32>
    %35 = vector.multi_reduction <add>, %34, %cst_10 [2] : vector<2x8x8xf32> to vector<2x8xf32>
    %36 = vector.shape_cast %35 : vector<2x8xf32> to vector<2x8x1xf32>
    %37 = tpu.reciprocal %36 {approx = true} : vector<2x8x1xf32> -> vector<2x8x1xf32>
    %38 = vector.broadcast %37 : vector<2x8x1xf32> to vector<2x8x8xf32>
    %39 = arith.mulf %34, %38 : vector<2x8x8xf32>
    "tpu.trace_start"() <{level = 10 : i32, message = "bqk,bkd->bqd"}> : () -> ()
    %cst_11 = arith.constant dense<0.000000e+00> : vector<2x8x8xf32>
    %40 = tpu.matmul %39, %26, %cst_11 {dimension_numbers = #tpu.dot_dimension_numbers<[2], [1], [1], [2], [0, 0, 0, 1, 1, 2], [0], [0]>} : vector<2x8x8xf32>, vector<2x8x8xf32>, vector<2x8x8xf32> -> vector<2x8x8xf32>
    "tpu.trace_stop"() : () -> ()
    %41 = vector.shape_cast %40 : vector<2x8x8xf32> to vector<16x8xf32>
    %c0_12 = arith.constant 0 : index
    %c0_13 = arith.constant 0 : index
    %42 = vector.load %arg6[%c0_12, %c0_13] : memref<16x32xf32, #tpu.memory_space<vmem>>, vector<16x8xf32>
    tpu.vector_store %arg6[%c0_12, %c0_13], %41 {strides = array<i32>} : memref<16x32xf32, #tpu.memory_space<vmem>>, vector<16x8xf32>,
    %43 = vector.extract_strided_slice %18 {offsets = [0, 8], sizes = [16, 8], strides = [1, 1]} : vector<16x32xf32> to vector<16x8xf32>
    %44 = vector.shape_cast %43 : vector<16x8xf32> to vector<2x8x8xf32>
    %45 = vector.extract_strided_slice %19 {offsets = [0, 8], sizes = [16, 8], strides = [1, 1]} : vector<16x32xf32> to vector<16x8xf32>
    %46 = vector.shape_cast %45 : vector<16x8xf32> to vector<2x8x8xf32>
    %47 = vector.extract_strided_slice %20 {offsets = [0, 8], sizes = [16, 8], strides = [1, 1]} : vector<16x32xf32> to vector<16x8xf32>
    %48 = vector.shape_cast %47 : vector<16x8xf32> to vector<2x8x8xf32>
    "tpu.trace_start"() <{level = 10 : i32, message = "bqd,bkd->bqk"}> : () -> ()
    %cst_14 = arith.constant dense<0.000000e+00> : vector<2x8x8xf32>
    %49 = tpu.matmul %44, %46, %cst_14 {dimension_numbers = #tpu.dot_dimension_numbers<[2], [2], [1], [1], [0, 0, 0, 1, 1, 1], [0], [0]>} : vector<2x8x8xf32>, vector<2x8x8xf32>, vector<2x8x8xf32> -> vector<2x8x8xf32>
    "tpu.trace_stop"() : () -> ()
    %cst_15 = arith.constant 0.353553385 : f32
    %50 = vector.broadcast %cst_15 : f32 to vector<2x8x8xf32>
    %51 = arith.mulf %49, %50 : vector<2x8x8xf32>
    %cst_16 = arith.constant dense<0xFF800000> : vector<2x8xf32>
    %52 = vector.multi_reduction <maximumf>, %51, %cst_16 [2] : vector<2x8x8xf32> to vector<2x8xf32>
    %53 = vector.shape_cast %52 : vector<2x8xf32> to vector<2x8x1xf32>
    %54 = vector.broadcast %53 : vector<2x8x1xf32> to vector<2x8x8xf32>
    %55 = arith.subf %51, %54 : vector<2x8x8xf32>
    %56 = math.exp %55 : vector<2x8x8xf32>
    %cst_17 = arith.constant dense<0.000000e+00> : vector<2x8xf32>
    %57 = vector.multi_reduction <add>, %56, %cst_17 [2] : vector<2x8x8xf32> to vector<2x8xf32>
    %58 = vector.shape_cast %57 : vector<2x8xf32> to vector<2x8x1xf32>
    %59 = tpu.reciprocal %58 {approx = true} : vector<2x8x1xf32> -> vector<2x8x1xf32>
    %60 = vector.broadcast %59 : vector<2x8x1xf32> to vector<2x8x8xf32>
    %61 = arith.mulf %56, %60 : vector<2x8x8xf32>
    "tpu.trace_start"() <{level = 10 : i32, message = "bqk,bkd->bqd"}> : () -> ()
    %cst_18 = arith.constant dense<0.000000e+00> : vector<2x8x8xf32>
    %62 = tpu.matmul %61, %48, %cst_18 {dimension_numbers = #tpu.dot_dimension_numbers<[2], [1], [1], [2], [0, 0, 0, 1, 1, 2], [0], [0]>} : vector<2x8x8xf32>, vector<2x8x8xf32>, vector<2x8x8xf32> -> vector<2x8x8xf32>
    "tpu.trace_stop"() : () -> ()
    %63 = vector.shape_cast %62 : vector<2x8x8xf32> to vector<16x8xf32>
    %c0_19 = arith.constant 0 : index
    %c8 = arith.constant 8 : index
    %64 = vector.load %arg6[%c0_19, %c8] : memref<16x32xf32, #tpu.memory_space<vmem>>, vector<16x8xf32>
    tpu.vector_store %arg6[%c0_19, %c8], %63 {strides = array<i32>} : memref<16x32xf32, #tpu.memory_space<vmem>>, vector<16x8xf32>,
    %65 = vector.extract_strided_slice %18 {offsets = [0, 16], sizes = [16, 8], strides = [1, 1]} : vector<16x32xf32> to vector<16x8xf32>
    %66 = vector.shape_cast %65 : vector<16x8xf32> to vector<2x8x8xf32>
    %67 = vector.extract_strided_slice %19 {offsets = [0, 16], sizes = [16, 8], strides = [1, 1]} : vector<16x32xf32> to vector<16x8xf32>
    %68 = vector.shape_cast %67 : vector<16x8xf32> to vector<2x8x8xf32>
    %69 = vector.extract_strided_slice %20 {offsets = [0, 16], sizes = [16, 8], strides = [1, 1]} : vector<16x32xf32> to vector<16x8xf32>
    %70 = vector.shape_cast %69 : vector<16x8xf32> to vector<2x8x8xf32>
    "tpu.trace_start"() <{level = 10 : i32, message = "bqd,bkd->bqk"}> : () -> ()
    %cst_20 = arith.constant dense<0.000000e+00> : vector<2x8x8xf32>
    %71 = tpu.matmul %66, %68, %cst_20 {dimension_numbers = #tpu.dot_dimension_numbers<[2], [2], [1], [1], [0, 0, 0, 1, 1, 1], [0], [0]>} : vector<2x8x8xf32>, vector<2x8x8xf32>, vector<2x8x8xf32> -> vector<2x8x8xf32>
    "tpu.trace_stop"() : () -> ()
    %cst_21 = arith.constant 0.353553385 : f32
    %72 = vector.broadcast %cst_21 : f32 to vector<2x8x8xf32>
    %73 = arith.mulf %71, %72 : vector<2x8x8xf32>
    %cst_22 = arith.constant dense<0xFF800000> : vector<2x8xf32>
    %74 = vector.multi_reduction <maximumf>, %73, %cst_22 [2] : vector<2x8x8xf32> to vector<2x8xf32>
    %75 = vector.shape_cast %74 : vector<2x8xf32> to vector<2x8x1xf32>
    %76 = vector.broadcast %75 : vector<2x8x1xf32> to vector<2x8x8xf32>
    %77 = arith.subf %73, %76 : vector<2x8x8xf32>
    %78 = math.exp %77 : vector<2x8x8xf32>
    %cst_23 = arith.constant dense<0.000000e+00> : vector<2x8xf32>
    %79 = vector.multi_reduction <add>, %78, %cst_23 [2] : vector<2x8x8xf32> to vector<2x8xf32>
    %80 = vector.shape_cast %79 : vector<2x8xf32> to vector<2x8x1xf32>
    %81 = tpu.reciprocal %80 {approx = true} : vector<2x8x1xf32> -> vector<2x8x1xf32>
    %82 = vector.broadcast %81 : vector<2x8x1xf32> to vector<2x8x8xf32>
    %83 = arith.mulf %78, %82 : vector<2x8x8xf32>
    "tpu.trace_start"() <{level = 10 : i32, message = "bqk,bkd->bqd"}> : () -> ()
    %cst_24 = arith.constant dense<0.000000e+00> : vector<2x8x8xf32>
    %84 = tpu.matmul %83, %70, %cst_24 {dimension_numbers = #tpu.dot_dimension_numbers<[2], [1], [1], [2], [0, 0, 0, 1, 1, 2], [0], [0]>} : vector<2x8x8xf32>, vector<2x8x8xf32>, vector<2x8x8xf32> -> vector<2x8x8xf32>
    "tpu.trace_stop"() : () -> ()
    %85 = vector.shape_cast %84 : vector<2x8x8xf32> to vector<16x8xf32>
    %c0_25 = arith.constant 0 : index
    %c16 = arith.constant 16 : index
    %86 = vector.load %arg6[%c0_25, %c16] : memref<16x32xf32, #tpu.memory_space<vmem>>, vector<16x8xf32>
    tpu.vector_store %arg6[%c0_25, %c16], %85 {strides = array<i32>} : memref<16x32xf32, #tpu.memory_space<vmem>>, vector<16x8xf32>,
    %87 = vector.extract_strided_slice %18 {offsets = [0, 24], sizes = [16, 8], strides = [1, 1]} : vector<16x32xf32> to vector<16x8xf32>
    %88 = vector.shape_cast %87 : vector<16x8xf32> to vector<2x8x8xf32>
    %89 = vector.extract_strided_slice %19 {offsets = [0, 24], sizes = [16, 8], strides = [1, 1]} : vector<16x32xf32> to vector<16x8xf32>
    %90 = vector.shape_cast %89 : vector<16x8xf32> to vector<2x8x8xf32>
    %91 = vector.extract_strided_slice %20 {offsets = [0, 24], sizes = [16, 8], strides = [1, 1]} : vector<16x32xf32> to vector<16x8xf32>
    %92 = vector.shape_cast %91 : vector<16x8xf32> to vector<2x8x8xf32>
    "tpu.trace_start"() <{level = 10 : i32, message = "bqd,bkd->bqk"}> : () -> ()
    %cst_26 = arith.constant dense<0.000000e+00> : vector<2x8x8xf32>
    %93 = tpu.matmul %88, %90, %cst_26 {dimension_numbers = #tpu.dot_dimension_numbers<[2], [2], [1], [1], [0, 0, 0, 1, 1, 1], [0], [0]>} : vector<2x8x8xf32>, vector<2x8x8xf32>, vector<2x8x8xf32> -> vector<2x8x8xf32>
    "tpu.trace_stop"() : () -> ()
    %cst_27 = arith.constant 0.353553385 : f32
    %94 = vector.broadcast %cst_27 : f32 to vector<2x8x8xf32>
    %95 = arith.mulf %93, %94 : vector<2x8x8xf32>
    %cst_28 = arith.constant dense<0xFF800000> : vector<2x8xf32>
    %96 = vector.multi_reduction <maximumf>, %95, %cst_28 [2] : vector<2x8x8xf32> to vector<2x8xf32>
    %97 = vector.shape_cast %96 : vector<2x8xf32> to vector<2x8x1xf32>
    %98 = vector.broadcast %97 : vector<2x8x1xf32> to vector<2x8x8xf32>
    %99 = arith.subf %95, %98 : vector<2x8x8xf32>
    %100 = math.exp %99 : vector<2x8x8xf32>
    %cst_29 = arith.constant dense<0.000000e+00> : vector<2x8xf32>
    %101 = vector.multi_reduction <add>, %100, %cst_29 [2] : vector<2x8x8xf32> to vector<2x8xf32>
    %102 = vector.shape_cast %101 : vector<2x8xf32> to vector<2x8x1xf32>
    %103 = tpu.reciprocal %102 {approx = true} : vector<2x8x1xf32> -> vector<2x8x1xf32>
    %104 = vector.broadcast %103 : vector<2x8x1xf32> to vector<2x8x8xf32>
    %105 = arith.mulf %100, %104 : vector<2x8x8xf32>
    "tpu.trace_start"() <{level = 10 : i32, message = "bqk,bkd->bqd"}> : () -> ()
    %cst_30 = arith.constant dense<0.000000e+00> : vector<2x8x8xf32>
    %106 = tpu.matmul %105, %92, %cst_30 {dimension_numbers = #tpu.dot_dimension_numbers<[2], [1], [1], [2], [0, 0, 0, 1, 1, 2], [0], [0]>} : vector<2x8x8xf32>, vector<2x8x8xf32>, vector<2x8x8xf32> -> vector<2x8x8xf32>
    "tpu.trace_stop"() : () -> ()
    %107 = vector.shape_cast %106 : vector<2x8x8xf32> to vector<16x8xf32>
    %c0_31 = arith.constant 0 : index
    %c24 = arith.constant 24 : index
    %108 = vector.load %arg6[%c0_31, %c24] : memref<16x32xf32, #tpu.memory_space<vmem>>, vector<16x8xf32>
    tpu.vector_store %arg6[%c0_31, %c24], %107 {strides = array<i32>} : memref<16x32xf32, #tpu.memory_space<vmem>>, vector<16x8xf32>,
    %c0_32 = arith.constant 0 : index
    %c0_33 = arith.constant 0 : index
    %109 = vector.load %arg6[%c0_32, %c0_33] : memref<16x32xf32, #tpu.memory_space<vmem>>, vector<16x32xf32>
    %cst_34 = arith.constant dense<0.000000e+00> : vector<16x32xf32>
    %110 = tpu.matmul %109, %4, %cst_34 {dimension_numbers = #tpu.dot_dimension_numbers<[1], [0], [0], [1], [0, 0, 1, 1], [], []>} : vector<16x32xf32>, vector<32x32xf32>, vector<16x32xf32> -> vector<16x32xf32>
    %111 = vector.broadcast %8 : vector<1x32xf32> to vector<16x32xf32>
    %112 = arith.addf %110, %111 : vector<16x32xf32>
    %113 = arith.addf %0, %112 : vector<16x32xf32>
    %cst_35 = arith.constant dense<0.000000e+00> : vector<16xf32>
    %114 = vector.multi_reduction <add>, %113, %cst_35 [1] : vector<16x32xf32> to vector<16xf32>
    %115 = vector.shape_cast %114 : vector<16xf32> to vector<16x1xf32>
    %cst_36 = arith.constant 3.200000e+01 : f32
    %116 = vector.broadcast %cst_36 : f32 to vector<16x1xf32>
    %117 = arith.divf %115, %116 : vector<16x1xf32>
    %118 = vector.broadcast %117 : vector<16x1xf32> to vector<16x32xf32>
    %119 = arith.subf %113, %118 : vector<16x32xf32>
    %120 = arith.mulf %119, %119 : vector<16x32xf32>
    %cst_37 = arith.constant dense<0.000000e+00> : vector<16xf32>
    %121 = vector.multi_reduction <add>, %120, %cst_37 [1] : vector<16x32xf32> to vector<16xf32>
    %122 = vector.shape_cast %121 : vector<16xf32> to vector<16x1xf32>
    %cst_38 = arith.constant 3.200000e+01 : f32
    %123 = vector.broadcast %cst_38 : f32 to vector<16x1xf32>
    %124 = arith.divf %122, %123 : vector<16x1xf32>
    %125 = vector.broadcast %117 : vector<16x1xf32> to vector<16x32xf32>
    %126 = arith.subf %113, %125 : vector<16x32xf32>
    %cst_39 = arith.constant 9.99999974E-6 : f32
    %127 = vector.broadcast %cst_39 : f32 to vector<16x1xf32>
    %128 = arith.addf %124, %127 : vector<16x1xf32>
    %129 = math.rsqrt %128 : vector<16x1xf32>
    %130 = vector.broadcast %129 : vector<16x1xf32> to vector<16x32xf32>
    %131 = arith.mulf %126, %130 : vector<16x32xf32>
    %132 = vector.broadcast %11 : vector<1x32xf32> to vector<16x32xf32>
    %133 = arith.mulf %131, %132 : vector<16x32xf32>
    %134 = vector.broadcast %12 : vector<1x32xf32> to vector<16x32xf32>
    %135 = arith.addf %133, %134 : vector<16x32xf32>
    %cst_40 = arith.constant dense<0.000000e+00> : vector<16x64xf32>
    %136 = tpu.matmul %135, %5, %cst_40 {dimension_numbers = #tpu.dot_dimension_numbers<[1], [0], [0], [1], [0, 0, 1, 1], [], []>} : vector<16x32xf32>, vector<32x64xf32>, vector<16x64xf32> -> vector<16x64xf32>
    %137 = vector.broadcast %9 : vector<1x64xf32> to vector<16x64xf32>
    %138 = arith.addf %136, %137 : vector<16x64xf32>
    %cst_41 = arith.constant 0.000000e+00 : f32
    %139 = vector.broadcast %cst_41 : f32 to vector<16x64xf32>
    %140 = arith.maximumf %138, %139 : vector<16x64xf32>
    %cst_42 = arith.constant dense<0.000000e+00> : vector<16x32xf32>
    %141 = tpu.matmul %140, %6, %cst_42 {dimension_numbers = #tpu.dot_dimension_numbers<[1], [0], [0], [1], [0, 0, 1, 1], [], []>} : vector<16x64xf32>, vector<64x32xf32>, vector<16x32xf32> -> vector<16x32xf32>
    %142 = vector.broadcast %10 : vector<1x32xf32> to vector<16x32xf32>
    %143 = arith.addf %141, %142 : vector<16x32xf32>
    %144 = arith.addf %135, %143 : vector<16x32xf32>
    %cst_43 = arith.constant dense<0.000000e+00> : vector<16xf32>
    %145 = vector.multi_reduction <add>, %144, %cst_43 [1] : vector<16x32xf32> to vector<16xf32>
    %146 = vector.shape_cast %145 : vector<16xf32> to vector<16x1xf32>
    %cst_44 = arith.constant 3.200000e+01 : f32
    %147 = vector.broadcast %cst_44 : f32 to vector<16x1xf32>
    %148 = arith.divf %146, %147 : vector<16x1xf32>
    %149 = vector.broadcast %148 : vector<16x1xf32> to vector<16x32xf32>
    %150 = arith.subf %144, %149 : vector<16x32xf32>
    %151 = arith.mulf %150, %150 : vector<16x32xf32>
    %cst_45 = arith.constant dense<0.000000e+00> : vector<16xf32>
    %152 = vector.multi_reduction <add>, %151, %cst_45 [1] : vector<16x32xf32> to vector<16xf32>
    %153 = vector.shape_cast %152 : vector<16xf32> to vector<16x1xf32>
    %cst_46 = arith.constant 3.200000e+01 : f32
    %154 = vector.broadcast %cst_46 : f32 to vector<16x1xf32>
    %155 = arith.divf %153, %154 : vector<16x1xf32>
    %156 = vector.broadcast %148 : vector<16x1xf32> to vector<16x32xf32>
    %157 = arith.subf %144, %156 : vector<16x32xf32>
    %cst_47 = arith.constant 9.99999974E-6 : f32
    %158 = vector.broadcast %cst_47 : f32 to vector<16x1xf32>
    %159 = arith.addf %155, %158 : vector<16x1xf32>
    %160 = math.rsqrt %159 : vector<16x1xf32>
    %161 = vector.broadcast %160 : vector<16x1xf32> to vector<16x32xf32>
    %162 = arith.mulf %157, %161 : vector<16x32xf32>
    %163 = vector.broadcast %13 : vector<1x32xf32> to vector<16x32xf32>
    %164 = arith.mulf %162, %163 : vector<16x32xf32>
    %165 = vector.broadcast %14 : vector<1x32xf32> to vector<16x32xf32>
    %166 = arith.addf %164, %165 : vector<16x32xf32>
    %c0_48 = arith.constant 0 : index
    %c0_49 = arith.constant 0 : index
    %167 = vector.load %arg5[%c0_48, %c0_49] : memref<16x32xf32, #tpu.memory_space<vmem>>, vector<16x32xf32>
    tpu.vector_store %arg5[%c0_48, %c0_49], %166 {strides = array<i32>} : memref<16x32xf32, #tpu.memory_space<vmem>>, vector<16x32xf32>,
    return
  }
  func.func @transform_0(%arg0: i32) -> (i32, i32) {
    %c0_i32 = arith.constant 0 : i32
    %c0_i32_0 = arith.constant 0 : i32
    %c0_i32_1 = arith.constant 0 : i32
    return %c0_i32, %c0_i32_0 : i32, i32
  }
  func.func @transform_1(%arg0: i32) -> (i32, i32) {
    %c0_i32 = arith.constant 0 : i32
    %c0_i32_0 = arith.constant 0 : i32
    %c0_i32_1 = arith.constant 0 : i32
    return %c0_i32, %c0_i32_0 : i32, i32
  }
  func.func @transform_2(%arg0: i32) -> (i32, i32) {
    %c0_i32 = arith.constant 0 : i32
    %c0_i32_0 = arith.constant 0 : i32
    %c0_i32_1 = arith.constant 0 : i32
    return %c0_i32, %c0_i32_0 : i32, i32
  }
  func.func @transform_3(%arg0: i32) -> (i32, i32) {
    %c0_i32 = arith.constant 0 : i32
    %c0_i32_0 = arith.constant 0 : i32
    %c0_i32_1 = arith.constant 0 : i32
    return %c0_i32, %c0_i32_0 : i32, i32
  }
  func.func @transform_4(%arg0: i32) -> (i32, i32) {
    %c0_i32 = arith.constant 0 : i32
    %c0_i32_0 = arith.constant 0 : i32
    %c0_i32_1 = arith.constant 0 : i32
    return %c0_i32, %c0_i32_0 : i32, i32
  }
}

</mosaic_0001>

<bundles_post_ra>
// kernel: tpu_custom_call.1
= control target key start
LH: loop header
LB: loop body
LE: loop exit
PB: predicated region body
PF: predicated region fallthrough
CT: control target
= control target key end

     0   :  { %vm41_vm0 = vcmask 261120   ;;  %s2522_s0 = inlined_call_operand.vmem [shape: f32[16,32], index: 0, kind: input, shape index: {}]   ;;  %s2523_s1 = inlined_call_operand.vmem [shape: f32[32,192], index: 1, kind: input, shape index: {}]   ;;  %s2524_s2 = inlined_call_operand.vmem [shape: f32[64,32], index: 2, kind: input, shape index: {}]   ;;  %s2525_s3 = inlined_call_operand.vmem [shape: f32[8,128], index: 3, kind: input, shape index: {}]   ;;  %s2526_s4 = inlined_call_operand.hbm [shape: f32[16,32], index: 4, kind: output, shape index: {}]  }
   0x1   :  { %v2264_v0 = vld [vmem:[%s2523_s1] sm:$0xff]  ;;  %v2269_v1 = vld [vmem:[%s2523_s1 + $0x10] sm:$0xff] }
   0x2   :  { %v2274_v2 = vld [vmem:[%s2523_s1 + $0x20] sm:$0xff]  ;;  %v2143_v3 = vpack.i.bf16 %v2269_v1, %v2264_v0  ;;  %v2084_v4 = vpack.c.bf16 %v2269_v1, %v2264_v0  ;;  %v2283_v5 = vld [vmem:[%s2523_s1 + $0x30] sm:$0xff] }
   0x3   :  { %v2288_v6 = vld [vmem:[%s2522_s0] sm:$0xff]  ;;  %v2088_v7 = vpack.c.bf16 %v2283_v5, %v2274_v2 }
   0x4   :  { %1960 = vmatprep.mubr.msk.f32.mxu1 %vm41_vm0, %v2288_v6 }
   0x5   :  { %9 = vsyncpa [#allocation4], 0  ;;  %2085 = vmatprep.subr.bf16.mxu1 %v2084_v4  ;;  %v2297_v8 = vld [vmem:[%s2522_s0 + $0x8] sm:$0xff]  ;;  %v2217_v9 = vmov 0.0   ;;  %v37_v10 = vlaneseq  ;;  %vm2218_vm1 = vmmov 0   ;;  %v2313_v13 = vld [vmem:[%s2525_s3] sm:$0xff] }
   0x6   :  { %2087 = vmatpush3.bf16.msra.mxu1 %v2084_v4  ;;  %1973 = vmatprep.subr.mxu0 %v2217_v9  ;;  %s2219_s28 = smov 96   ;;  %vm126_vm2 = vcmask 64512   ;;  %s2220_s3 = smov 64   ;;  %vm796_vm3 = vcmask 130112   ;;  %vm1139_vm4 = vcmask 195712   ;;  %vm1482_vm5 = vcmask 261312  }
   0x7   :  { %2089 = vmatprep.subr.bf16.mxu1 %v2088_v7  ;;  %v2303_v11 = vshrl.u32 %v37_v10, 7  ;;  %1975 = vmatprep.mubr.msk.f32.mxu0 %vm2218_vm1, %v2217_v9  ;;  %s2221_s29 = smov 88   ;;  %s2222_s30 = smov 120   ;;  %vm1720_vm6 = vcmask 523264  }
   0x8   :  { %s2223_s5 = smov 56   ;;  %s2224_s6 = smov 80  }
   0x9   :  { %v39_v12 = vsub.s32 0, %v2303_v11  ;;  %s2225_s7 = smov 112   ;;  %s2226_s8 = smov 48  }
   0xa   :  { %2091 = vmatpush3.bf16.msra.mxu1 %v2088_v7  ;;  %s2227_s9 = smov 72   ;;  %s2228_s10 = smov 104  }
   0xb   :  { %1963 = vmatprep.subr.mxu1 %v2217_v9  ;;  %v40_v14 = vrot.slane %v2313_v13, %v39_v12  ;;  %s2229_s11 = smov 40   ;;  %s2230_s12 = smov 8  }
   0xc   :  { %s2231_s13 = smov 16   ;;  %s2232_s14 = smov 32  }
   0xd   :  { %1961 = vmatmul.mubr.msk.f32.vlgmr.msra.gmra.mrb[0].mxu1 %vm41_vm0, %v2297_v8  ;;  %s2233_s15 = smov 24  }
   0xe   :  { %1965 = vmatprep.mubr.msk.f32.mxu1 %vm2218_vm1, %v2217_v9 }
  0xe0   :  { %v1962_v15 = vpop.f32.mrb[0].mxu1 }
  0xe1   :  { %v114_v16 = vpop.f32.mrb[1].mxu1  ;;  %v2319_v18 = vadd.f32 %v1962_v15, %v40_v14 }
  0xe2   :  { %v2316_v17 = vadd.f32 %v114_v16, %v40_v14 }
  0xe4   :  { %124 = vrot.lane.b32.xlu0 %v2316_v17, %s2219_s28 }
  0xe8   :  { %202 = vrot.lane.b32.xlu0 %v2319_v18, %s2219_s28 }
 0x156   :  { %v125_v19 = vpop.permute.xlu0 %124 }
 0x157   :  { %1964 = vmatpush3.xpose.msk.msra.mxu1 %vm126_vm2, %v125_v19 }
 0x158   :  { %1968 = vmatprep.subr.mxu1 %v2217_v9 }
 0x15a   :  { %1966 = vmatmul.mubr.msk.f32.vlgmr.msra.gmra.mrb[2].mxu1 %vm126_vm2, %v2316_v17  ;;  %v203_v20 = vpop.permute.xlu0 %202 }
 0x15b   :  { %1969 = vmatpush3.xpose.msk.msra.mxu1 %vm126_vm2, %v203_v20  ;;  %1970 = vmatprep.mubr.msk.f32.mxu1 %vm2218_vm1, %v2217_v9 }
 0x15c   :  { %1978 = vmatprep.subr.mxu1 %v2217_v9 }
 0x15e   :  { %1971 = vmatmul.mubr.msk.f32.vlgmr.msra.gmra.mrb[4].mxu1 %vm126_vm2, %v2319_v18 }
 0x15f   :  { %1980 = vmatprep.mubr.msk.f32.mxu1 %vm2218_vm1, %v2217_v9 }
 0x22d   :  { %v197_v21 = vpop.f32.mrb[2].mxu1 }
 0x22e   :  { %v278_v22 = vmul.f32 0.35355338, %v197_v21  ;;  %v1967_v23 = vpop.f32.mrb[3].mxu1 }
 0x230   :  { %v280_v24 = vsel %vm126_vm2, %v278_v22, -inf }
 0x231   :  { %281 = vmax.xlane.f32.xlu1 %v280_v24  ;;  %v274_v25 = vpop.f32.mrb[4].mxu1 }
 0x232   :  { %v279_v26 = vmul.f32 0.35355338, %v274_v25  ;;  %v1972_v27 = vpop.f32.mrb[5].mxu1 }
 0x234   :  { %v283_v28 = vsel %vm126_vm2, %v279_v26, -inf }
 0x235   :  { %284 = vmax.xlane.f32.xlu1 %v283_v28 }
 0x246   :  { %302 = vrot.lane.b32.xlu1 %v2316_v17, %s2220_s3 }
 0x24a   :  { %378 = vrot.lane.b32.xlu1 %v2319_v18, %s2220_s3 }
 0x24e   :  { %458 = vrot.lane.b32.xlu1 %v2316_v17, %s2221_s29 }
 0x252   :  { %536 = vrot.lane.b32.xlu1 %v2319_v18, %s2221_s29 }
 0x2be   :  { %v282_v29 = vpop.xlane.xlu1 %281 }
 0x2bf   :  { %v286_v30 = vsub.f32 %v278_v22, %v282_v29 }
 0x2c1   :  { %v288_v31 = vmul.f32 1.442695, %v286_v30 }
 0x2c2   :  { %v285_v32 = vpop.xlane.xlu1 %284 }
 0x2c3   :  { %2153 = vpow2.f32 %v288_v31  ;;  %v287_v33 = vsub.f32 %v279_v26, %v285_v32 }
 0x2c5   :  { %v290_v34 = vmul.f32 1.442695, %v287_v33 }
 0x2c6   :  { %v303_v35 = vpop.permute.xlu1 %302 }
 0x2c7   :  { %2155 = vpow2.f32 %v290_v34  ;;  %1974 = vmatpush3.msra.mxu0 %v303_v35 }
 0x2c8   :  { %1983 = vmatprep.subr.mxu0 %v2217_v9 }
 0x2ca   :  { %v379_v36 = vpop.permute.xlu1 %378 }
 0x2cb   :  { %1979 = vmatpush3.msra.mxu1 %v379_v36 }
 0x2cc   :  { %1988 = vmatprep.subr.mxu1 %v2217_v9 }
 0x2cd   :  { %v2154_v37 = vpop.eup %2153 }
 0x2ce   :  { %v292_v38 = vsel %vm126_vm2, %v2154_v37, 0.0  ;;  %v459_v41 = vpop.permute.xlu1 %458 }
 0x2cf   :  { %293 = vadd.xlane.f32.xlu0 %v292_v38 }
 0x2d1   :  { %v2156_v39 = vpop.eup %2155 }
 0x2d2   :  { %v295_v40 = vsel %vm126_vm2, %v2156_v39, 0.0  ;;  %v537_v42 = vpop.permute.xlu1 %536 }
 0x2d3   :  { %296 = vadd.xlane.f32.xlu1 %v295_v40 }
 0x2e4   :  { %534 = vrot.lane.b32.xlu1 %v2319_v18, %s2222_s30 }
 0x2e5   :  { %456 = vrot.lane.b32.xlu0 %v2316_v17, %s2222_s30 }
 0x35c   :  { %v294_v43 = vpop.xlane.xlu0 %293 }
 0x35d   :  { %2157 = vrcp.f32 %v294_v43 }
 0x360   :  { %v297_v44 = vpop.xlane.xlu1 %296  ;;  %v457_v49 = vpop.permute.xlu0 %456 }
 0x361   :  { %2159 = vrcp.f32 %v297_v44 }
 0x364   :  { %v535_v50 = vpop.permute.xlu1 %534 }
 0x367   :  { %v2158_v45 = vpop.eup %2157 }
 0x368   :  { %v300_v46 = vmul.f32 %v2158_v45, %v2154_v37 }
 0x36a   :  { %1976 = vmatmul.mubr.msk.f32.vlgmr.msra.gmra.mrb[0].mxu0 %vm126_vm2, %v300_v46 }
 0x36b   :  { %v2160_v47 = vpop.eup %2159  ;;  %1984 = vmatpush3.xpose.msk.msra.mxu0 %vm126_vm2, %v459_v41  ;;  %1985 = vmatprep.mubr.msk.f32.mxu0 %vm2218_vm1, %v2217_v9 }
 0x36c   :  { %v301_v48 = vmul.f32 %v2160_v47, %v2156_v39  ;;  %1993 = vmatprep.subr.mxu0 %v2217_v9 }
 0x36e   :  { %1981 = vmatmul.mubr.msk.f32.vlgmr.msra.gmra.mrb[6].mxu1 %vm126_vm2, %v301_v48  ;;  %1986 = vmatmul.mubr.msk.f32.vlgmr.msra.gmra.mrb[2].mxu0 %vm126_vm2, %v457_v49 }
 0x36f   :  { %1989 = vmatpush3.xpose.msk.msra.mxu1 %vm126_vm2, %v537_v42  ;;  %1990 = vmatprep.mubr.msk.f32.mxu1 %vm2218_vm1, %v2217_v9 }
 0x370   :  { %1998 = vmatprep.subr.mxu1 %v2217_v9  ;;  %1995 = vmatprep.mubr.msk.f32.mxu0 %vm2218_vm1, %v2217_v9 }
 0x372   :  { %1991 = vmatmul.mubr.msk.f32.vlgmr.msra.gmra.mrb[8].mxu1 %vm126_vm2, %v535_v50 }
 0x373   :  { %2000 = vmatprep.mubr.msk.f32.mxu1 %vm2218_vm1, %v2217_v9 }
 0x43d   :  { %v374_v51 = vpop.f32.mrb[0].mxu0 }
 0x43e   :  { %454 = vst.msk [vmem:[#allocation2] sm:$0xff] %vm126_vm2, %v374_v51  ;;  %v1977_v52 = vpop.f32.mrb[1].mxu0 }
 0x441   :  { %v450_v53 = vpop.f32.mrb[6].mxu1  ;;  %v530_v54 = vpop.f32.mrb[2].mxu0 }
 0x442   :  { %455 = vst.msk [vmem:[#allocation2 + $0x8] sm:$0xff] %vm126_vm2, %v450_v53  ;;  %v612_v55 = vmul.f32 0.35355338, %v530_v54  ;;  %v1982_v56 = vpop.f32.mrb[7].mxu1  ;;  %v1987_v57 = vpop.f32.mrb[3].mxu0 }
 0x444   :  { %v614_v58 = vsel %vm126_vm2, %v612_v55, -inf }
 0x445   :  { %v608_v59 = vpop.f32.mrb[8].mxu1  ;;  %615 = vmax.xlane.f32.xlu1 %v614_v58 }
 0x446   :  { %v613_v60 = vmul.f32 0.35355338, %v608_v59  ;;  %v1992_v61 = vpop.f32.mrb[9].mxu1 }
 0x448   :  { %v617_v62 = vsel %vm126_vm2, %v613_v60, -inf }
 0x449   :  { %618 = vmax.xlane.f32.xlu0 %v617_v62 }
 0x456   :  { %636 = vrot.lane.b32.xlu1 %v2316_v17, %s2223_s5 }
 0x45a   :  { %801 = vrot.lane.b32.xlu1 %v2316_v17, %s2224_s6 }
 0x45e   :  { %879 = vrot.lane.b32.xlu1 %v2319_v18, %s2224_s6 }
 0x45f   :  { %712 = vrot.lane.b32.xlu0 %v2319_v18, %s2223_s5 }
 0x463   :  { %799 = vrot.lane.b32.xlu0 %v2316_v17, %s2225_s7 }
 0x4d2   :  { %v616_v63 = vpop.xlane.xlu1 %615 }
 0x4d3   :  { %v620_v4 = vsub.f32 %v612_v55, %v616_v63 }
 0x4d5   :  { %v622_v7 = vmul.f32 1.442695, %v620_v4 }
 0x4d6   :  { %v637_v10 = vpop.permute.xlu1 %636  ;;  %v619_v12 = vpop.xlane.xlu0 %618 }
 0x4d7   :  { %2161 = vpow2.f32 %v622_v7  ;;  %v621_v14 = vsub.f32 %v613_v60, %v619_v12  ;;  %1994 = vmatpush3.msra.mxu0 %v637_v10 }
 0x4d8   :  { %2003 = vmatprep.subr.mxu0 %v2217_v9 }
 0x4d9   :  { %v624_v15 = vmul.f32 1.442695, %v621_v14 }
 0x4da   :  { %v713_v16 = vpop.permute.xlu0 %712  ;;  %v802_v23 = vpop.permute.xlu1 %801 }
 0x4db   :  { %2163 = vpow2.f32 %v624_v15  ;;  %1999 = vmatpush3.msra.mxu1 %v713_v16 }
 0x4dc   :  { %2008 = vmatprep.subr.mxu1 %v2217_v9 }
 0x4de   :  { %v880_v24 = vpop.permute.xlu1 %879  ;;  %v800_v31 = vpop.permute.xlu0 %799 }
 0x4e1   :  { %v2162_v19 = vpop.eup %2161 }
 0x4e2   :  { %v626_v20 = vsel %vm126_vm2, %v2162_v19, 0.0 }
 0x4e3   :  { %627 = vadd.xlane.f32.xlu1 %v626_v20 }
 0x4e5   :  { %v2164_v21 = vpop.eup %2163 }
 0x4e6   :  { %v629_v22 = vsel %vm126_vm2, %v2164_v21, 0.0 }
 0x4e7   :  { %630 = vadd.xlane.f32.xlu1 %v629_v22 }
 0x4f8   :  { %877 = vrot.lane.b32.xlu1 %v2319_v18, %s2225_s7 }
 0x570   :  { %v628_v25 = vpop.xlane.xlu1 %627 }
 0x571   :  { %2165 = vrcp.f32 %v628_v25 }
 0x574   :  { %v631_v26 = vpop.xlane.xlu1 %630 }
 0x575   :  { %2167 = vrcp.f32 %v631_v26 }
 0x578   :  { %v878_v32 = vpop.permute.xlu1 %877 }
 0x57b   :  { %v2166_v27 = vpop.eup %2165 }
 0x57c   :  { %v634_v28 = vmul.f32 %v2166_v27, %v2162_v19 }
 0x57e   :  { %1996 = vmatmul.mubr.msk.f32.vlgmr.msra.gmra.mrb[4].mxu0 %vm126_vm2, %v634_v28 }
 0x57f   :  { %v2168_v29 = vpop.eup %2167  ;;  %2004 = vmatpush3.xpose.msk.msra.mxu0 %vm126_vm2, %v802_v23  ;;  %2005 = vmatprep.mubr.msk.f32.mxu0 %vm2218_vm1, %v2217_v9 }
 0x580   :  { %v635_v30 = vmul.f32 %v2168_v29, %v2164_v21  ;;  %2013 = vmatprep.subr.mxu0 %v2217_v9 }
 0x582   :  { %2001 = vmatmul.mubr.msk.f32.vlgmr.msra.gmra.mrb[10].mxu1 %vm126_vm2, %v635_v30  ;;  %2006 = vmatmul.mubr.msk.f32.vlgmr.msra.gmra.mrb[6].mxu0 %vm126_vm2, %v800_v31 }
 0x583   :  { %2009 = vmatpush3.xpose.msk.msra.mxu1 %vm126_vm2, %v880_v24  ;;  %2010 = vmatprep.mubr.msk.f32.mxu1 %vm2218_vm1, %v2217_v9 }
 0x584   :  { %2018 = vmatprep.subr.mxu1 %v2217_v9  ;;  %2015 = vmatprep.mubr.msk.f32.mxu0 %vm2218_vm1, %v2217_v9 }
 0x586   :  { %2011 = vmatmul.mubr.msk.f32.vlgmr.msra.gmra.mrb[12].mxu1 %vm126_vm2, %v878_v32 }
 0x587   :  { %2020 = vmatprep.mubr.msk.f32.mxu1 %vm2218_vm1, %v2217_v9 }
 0x651   :  { %v2392_v33 = vpop.f32.mrb[4].mxu0 }
 0x652   :  { %v1997_v34 = vpop.f32.mrb[5].mxu0 }
 0x655   :  { %v2394_v35 = vpop.f32.mrb[10].mxu1  ;;  %v873_v36 = vpop.f32.mrb[6].mxu0 }
 0x656   :  { %v955_v37 = vmul.f32 0.35355338, %v873_v36  ;;  %v2002_v38 = vpop.f32.mrb[11].mxu1  ;;  %v2007_v39 = vpop.f32.mrb[7].mxu0 }
 0x658   :  { %v957_v40 = vsel %vm126_vm2, %v955_v37, -inf }
 0x659   :  { %v951_v41 = vpop.f32.mrb[12].mxu1  ;;  %958 = vmax.xlane.f32.xlu0 %v957_v40 }
 0x65a   :  { %v956_v42 = vmul.f32 0.35355338, %v951_v41  ;;  %v2012_v43 = vpop.f32.mrb[13].mxu1 }
 0x65c   :  { %v960_v44 = vsel %vm126_vm2, %v956_v42, -inf }
 0x65d   :  { %961 = vmax.xlane.f32.xlu1 %v960_v44 }
 0x66e   :  { %979 = vrot.lane.b32.xlu1 %v2316_v17, %s2226_s8 }
 0x66f   :  { %1055 = vrot.lane.b32.xlu0 %v2319_v18, %s2226_s8 }
 0x672   :  { %1144 = vrot.lane.b32.xlu1 %v2316_v17, %s2227_s9 }
 0x676   :  { %1222 = vrot.lane.b32.xlu1 %v2319_v18, %s2227_s9 }
 0x67a   :  { %1220 = vrot.lane.b32.xlu1 %v2319_v18, %s2228_s10 }
 0x6e6   :  { %v959_v45 = vpop.xlane.xlu0 %958 }
 0x6e7   :  { %v963_v46 = vsub.f32 %v955_v37, %v959_v45 }
 0x6e9   :  { %v965_v47 = vmul.f32 1.442695, %v963_v46 }
 0x6ea   :  { %v962_v48 = vpop.xlane.xlu1 %961  ;;  %v1056_v49 = vpop.permute.xlu0 %1055 }
 0x6eb   :  { %2169 = vpow2.f32 %v965_v47  ;;  %v964_v50 = vsub.f32 %v956_v42, %v962_v48  ;;  %2019 = vmatpush3.msra.mxu1 %v1056_v49  ;;  %v2148_v49 = vpack.i.bf16 %v2283_v5, %v2274_v2  ;;  %v1489_v5 = vsub.s32 1, %v2303_v11 }
 0x6ec   :  { %2028 = vmatprep.subr.mxu1 %v2217_v9 }
 0x6ed   :  { %v967_v51 = vmul.f32 1.442695, %v964_v50 }
 0x6ee   :  { %v980_v52 = vpop.permute.xlu1 %979 }
 0x6ef   :  { %2171 = vpow2.f32 %v967_v51  ;;  %2014 = vmatpush3.msra.mxu0 %v980_v52 }
 0x6f0   :  { %2023 = vmatprep.subr.mxu0 %v2217_v9 }
 0x6f2   :  { %v1145_v59 = vpop.permute.xlu1 %1144 }
 0x6f5   :  { %v2170_v53 = vpop.eup %2169 }
 0x6f6   :  { %v969_v54 = vsel %vm126_vm2, %v2170_v53, 0.0  ;;  %v1223_v63 = vpop.permute.xlu1 %1222 }
 0x6f7   :  { %970 = vadd.xlane.f32.xlu0 %v969_v54 }
 0x6f9   :  { %v2172_v55 = vpop.eup %2171 }
 0x6fa   :  { %v972_v56 = vsel %vm126_vm2, %v2172_v55, 0.0  ;;  %v1221_v10 = vpop.permute.xlu1 %1220 }
 0x6fb   :  { %973 = vadd.xlane.f32.xlu0 %v972_v56 }
 0x711   :  { %1142 = vrot.lane.b32.xlu0 %v2316_v17, %s2228_s10 }
 0x784   :  { %v971_v57 = vpop.xlane.xlu0 %970 }
 0x785   :  { %2173 = vrcp.f32 %v971_v57 }
 0x788   :  { %v974_v58 = vpop.xlane.xlu0 %973 }
 0x789   :  { %2175 = vrcp.f32 %v974_v58 }
 0x78c   :  { %v1143_v7 = vpop.permute.xlu0 %1142 }
 0x78f   :  { %v2174_v60 = vpop.eup %2173 }
 0x790   :  { %v977_v61 = vmul.f32 %v2174_v60, %v2170_v53 }
 0x792   :  { %2016 = vmatmul.mubr.msk.f32.vlgmr.msra.gmra.mrb[8].mxu0 %vm126_vm2, %v977_v61 }
 0x793   :  { %v2176_v62 = vpop.eup %2175  ;;  %2024 = vmatpush3.xpose.msk.msra.mxu0 %vm126_vm2, %v1145_v59  ;;  %2025 = vmatprep.mubr.msk.f32.mxu0 %vm2218_vm1, %v2217_v9  ;;  %v1490_v59 = vrot.slane %v2313_v13, %v1489_v5 }
 0x794   :  { %v978_v4 = vmul.f32 %v2176_v62, %v2172_v55  ;;  %2033 = vmatprep.subr.mxu0 %v2217_v9 }
 0x796   :  { %2021 = vmatmul.mubr.msk.f32.vlgmr.msra.gmra.mrb[14].mxu1 %vm126_vm2, %v978_v4  ;;  %2026 = vmatmul.mubr.msk.f32.vlgmr.msra.gmra.mrb[10].mxu0 %vm126_vm2, %v1143_v7 }
 0x797   :  { %2029 = vmatpush3.xpose.msk.msra.mxu1 %vm126_vm2, %v1223_v63  ;;  %2030 = vmatprep.mubr.msk.f32.mxu1 %vm2218_vm1, %v2217_v9 }
 0x798   :  { %2038 = vmatprep.subr.mxu1 %v2217_v9  ;;  %2035 = vmatprep.mubr.msk.f32.mxu0 %vm2218_vm1, %v2217_v9 }
 0x79a   :  { %2031 = vmatmul.mubr.msk.f32.vlgmr.msra.gmra.mrb[16].mxu1 %vm126_vm2, %v1221_v10 }
 0x79b   :  { %2040 = vmatprep.mubr.msk.f32.mxu1 %vm2218_vm1, %v2217_v9 }
 0x865   :  { %v1051_v12 = vpop.f32.mrb[8].mxu0 }
 0x866   :  { %v2017_v14 = vpop.f32.mrb[9].mxu0 }
 0x869   :  { %v1127_v15 = vpop.f32.mrb[14].mxu1  ;;  %v1216_v16 = vpop.f32.mrb[10].mxu0 }
 0x86a   :  { %v1298_v19 = vmul.f32 0.35355338, %v1216_v16  ;;  %v2022_v20 = vpop.f32.mrb[15].mxu1  ;;  %v2027_v21 = vpop.f32.mrb[11].mxu0 }
 0x86c   :  { %v1300_v22 = vsel %vm126_vm2, %v1298_v19, -inf }
 0x86d   :  { %v1294_v23 = vpop.f32.mrb[16].mxu1  ;;  %1301 = vmax.xlane.f32.xlu0 %v1300_v22 }
 0x86e   :  { %v1299_v24 = vmul.f32 0.35355338, %v1294_v23  ;;  %v2032_v25 = vpop.f32.mrb[17].mxu1 }
 0x86f   :  { %v23_v25 = vld [vmem:[%s2523_s1 + $0x18] sm:$0xff] }
 0x870   :  { %v1303_v26 = vsel %vm126_vm2, %v1299_v24, -inf }
 0x871   :  { %1304 = vmax.xlane.f32.xlu1 %v1303_v26 }
 0x882   :  { %1322 = vrot.lane.b32.xlu1 %v2316_v17, %s2229_s11 }
 0x886   :  { %790 = vrot.lane.b32.xlu1 %v2392_v33, %s2230_s12 }
 0x88a   :  { %792 = vrot.lane.b32.xlu1 %v2394_v35, %s2230_s12 }
 0x88e   :  { %2144 = vrot.lane.b32.xlu1 %v2143_v3, %s2232_s14 }
 0x8fa   :  { %v1302_v9 = vpop.xlane.xlu0 %1301 }
 0x8fb   :  { %v1306_v27 = vsub.f32 %v1298_v19, %v1302_v9  ;;  %v25_v9 = vld [vmem:[%s2523_s1 + $0x28] sm:$0xff] }
 0x8fd   :  { %v1308_v28 = vmul.f32 1.442695, %v1306_v27  ;;  %v27_v27 = vld [vmem:[%s2523_s1 + $0x38] sm:$0xff] }
 0x8fe   :  { %v1305_v29 = vpop.xlane.xlu1 %1304 }
 0x8ff   :  { %2177 = vpow2.f32 %v1308_v28  ;;  %v1307_v30 = vsub.f32 %v1299_v24, %v1305_v29  ;;  %v2104_v28 = vpack.c.bf16 %v27_v27, %v25_v9  ;;  %v29_v29 = vld [vmem:[%s2524_s2] sm:$0xff] }
 0x901   :  { %v1310_v31 = vmul.f32 1.442695, %v1307_v30  ;;  %v30_v30 = vld [vmem:[%s2524_s2 + $0x8] sm:$0xff] }
 0x902   :  { %v1323_v32 = vpop.permute.xlu1 %1322 }
 0x903   :  { %2179 = vpow2.f32 %v1310_v31  ;;  %2034 = vmatpush3.msra.mxu0 %v1323_v32  ;;  %v31_v31 = vld [vmem:[%s2524_s2 + $0x10] sm:$0xff]  ;;  %v2108_v32 = vpack.c.bf16 %v30_v30, %v29_v29 }
 0x906   :  { %v791_v34 = vpop.permute.xlu1 %790 }
 0x907   :  { %797 = vst.msk [vmem:[#allocation2] sm:$0xff] %vm796_vm3, %v791_v34  ;;  %v32_v34 = vld [vmem:[%s2524_s2 + $0x18] sm:$0xff] }
 0x909   :  { %v2178_v17 = vpop.eup %2177 }
 0x90a   :  { %v793_v36 = vpop.permute.xlu1 %792  ;;  %v1312_v33 = vsel %vm126_vm2, %v2178_v17, 0.0 }
 0x90b   :  { %798 = vst.msk [vmem:[#allocation2 + $0x8] sm:$0xff] %vm796_vm3, %v793_v36  ;;  %1313 = vadd.xlane.f32.xlu0 %v1312_v33  ;;  %v33_v36 = vld [vmem:[%s2524_s2 + $0x20] sm:$0xff]  ;;  %v34_v33 = vld [vmem:[%s2524_s2 + $0x28] sm:$0xff] }
 0x90d   :  { %v2180_v35 = vpop.eup %2179 }
 0x90e   :  { %v1315_v37 = vsel %vm126_vm2, %v2180_v35, 0.0  ;;  %v2145_v0 = vpop.permute.xlu1 %2144 }
 0x90f   :  { %1316 = vadd.xlane.f32.xlu0 %v1315_v37  ;;  %v2147_v1 = vunpack.i.h.bf16 %v2145_v0  ;;  %v2146_v3 = vunpack.i.l.bf16 %v2145_v0 }
 0x911   :  { %v2092_v46 = vpack.c.bf16 %v2147_v1, %v2146_v3 }
 0x913   :  { %2093 = vmatprep.subr.bf16.mxu0 %v2092_v46 }
 0x925   :  { %1398 = vrot.lane.b32.xlu0 %v2319_v18, %s2229_s11 }
 0x929   :  { %1133 = vrot.lane.b32.xlu0 %v1051_v12, %s2231_s13 }
 0x92d   :  { %1135 = vrot.lane.b32.xlu0 %v1127_v15, %s2231_s13 }
 0x998   :  { %v1314_v38 = vpop.xlane.xlu0 %1313 }
 0x999   :  { %2181 = vrcp.f32 %v1314_v38 }
 0x99c   :  { %v1317_v39 = vpop.xlane.xlu0 %1316 }
 0x99d   :  { %2183 = vrcp.f32 %v1317_v39 }
 0x9a0   :  { %v1399_v40 = vpop.permute.xlu0 %1398 }
 0x9a1   :  { %2039 = vmatpush3.msra.mxu1 %v1399_v40 }
 0x9a3   :  { %v2182_v41 = vpop.eup %2181 }
 0x9a4   :  { %v1320_v42 = vmul.f32 %v2182_v41, %v2178_v17  ;;  %v1134_v43 = vpop.permute.xlu0 %1133  ;;  %v2112_v17 = vpack.c.bf16 %v32_v34, %v31_v31  ;;  %v1832_v31 = vsub.s32 6, %v2303_v11 }
 0x9a5   :  { %1140 = vst.msk [vmem:[#allocation2] sm:$0xff] %vm1139_vm4, %v1134_v43  ;;  %v1619_v43 = vsub.s32 4, %v2303_v11 }
 0x9a6   :  { %2036 = vmatmul.mubr.msk.f32.vlgmr.msra.gmra.mrb[12].mxu0 %vm126_vm2, %v1320_v42  ;;  %v1833_v34 = vrot.slane %v2313_v13, %v1832_v31 }
 0x9a7   :  { %v2184_v18 = vpop.eup %2183  ;;  %2095 = vmatpush3.bf16.msra.mxu0 %v2092_v46 }
 0x9a8   :  { %v1321_v44 = vmul.f32 %v2184_v18, %v2180_v35  ;;  %v1136_v45 = vpop.permute.xlu0 %1135  ;;  %v2116_v35 = vpack.c.bf16 %v34_v33, %v33_v36  ;;  %v1625_v18 = vsub.s32 5, %v2303_v11 }
 0x9a9   :  { %1141 = vst.msk [vmem:[#allocation2 + $0x8] sm:$0xff] %vm1139_vm4, %v1136_v45 }
 0x9aa   :  { %2041 = vmatmul.mubr.msk.f32.vlgmr.msra.gmra.mrb[18].mxu1 %vm126_vm2, %v1321_v44  ;;  %v1620_v44 = vrot.slane %v2313_v13, %v1619_v43  ;;  %v1626_v1 = vrot.slane %v2313_v13, %v1625_v18 }
 0xa79   :  { %v1394_v47 = vpop.f32.mrb[12].mxu0 }
 0xa7a   :  { %1476 = vrot.lane.b32.xlu1 %v1394_v47, %s2233_s15  ;;  %v2037_v48 = vpop.f32.mrb[13].mxu0 }
 0xa7d   :  { %v1470_v50 = vpop.f32.mrb[18].mxu1 }
 0xa7e   :  { %1478 = vrot.lane.b32.xlu0 %v1470_v50, %s2233_s15  ;;  %v2042_v51 = vpop.f32.mrb[19].mxu1  ;;  %2149 = vrot.lane.b32.xlu1 %v2148_v49, %s2232_s14 }
 0xa7f   :  { %v35_v51 = vld [vmem:[%s2524_s2 + $0x30] sm:$0xff] }
 0xaec   :  { %v1477_v52 = vpop.permute.xlu1 %1476 }
 0xaed   :  { %1483 = vst.msk [vmem:[#allocation2] sm:$0xff] %vm1482_vm5, %v1477_v52  ;;  %v36_v52 = vld [vmem:[%s2524_s2 + $0x38] sm:$0xff]  ;;  %s2234_s2 = smov [#allocation3]  }
 0xaee   :  { %s1849_s11 = sshll.u32 %s2234_s2, 4  ;;  %s1850_s11 = int_to_ptr.vmem [resolvable:$true] %s1849_s11 }
 0xaef   :  { %s2193_s13 = scalar_lea.vmem %s1850_s11, 256  ;;  %p2198_p1 = scmp.lt.s32.totalorder %s1850_s11, %s1850_s11 }
 0xaf0   :  { %v1479_v53 = vpop.permute.xlu0 %1478  ;;  %v2150_v54 = vpop.permute.xlu1 %2149  ;;  %p2194_p0 = scmp.ne.s32.totalorder %s1850_s11, %s2193_s13  ;;  %p2199_p2 = scmp.lt.s32.totalorder %s2193_s13, %s2193_s13 }
 0xaf1   :  { %1484 = vst.msk [vmem:[#allocation2 + $0x8] sm:$0xff] %vm1482_vm5, %v1479_v53  ;;  %v2152_v55 = vunpack.i.h.bf16 %v2150_v54  ;;  %v2151_v56 = vunpack.i.l.bf16 %v2150_v54  ;;  %v2120_v53 = vpack.c.bf16 %v36_v52, %v35_v51  ;;  %v1631_v54 = vsub.s32 2, %v2303_v11 }
 0xaf2   :  { %p2200_p3 = por %p2199_p2, %p2198_p1 }
 0xaf3   :  { %v2096_v57 = vpack.c.bf16 %v2152_v55, %v2151_v56  ;;  %v1632_v55 = vrot.slane %v2313_v13, %v1631_v54 }
 0xaf4   :  { %v1485_v58 = vld [vmem:[#allocation2] sm:$0xff]  ;;  %p2201_p4 = pnand %p2200_p3, %p2194_p0 }
 0xaf5   :  { %2097 = vmatprep.subr.bf16.mxu0 %v2096_v57  ;;  %2051 = vmatprep.mubr.msk.f32.mxu0 %vm41_vm0, %v1485_v58 }
 0xaf6   :  { %2099 = vmatpush3.bf16.msra.mxu0 %v2096_v57 }
 0xaf7   :  { %2109 = vmatprep.subr.bf16.mxu0 %v2108_v32 }
 0xaf8   :  { %v1486_v2 = vld [vmem:[#allocation2 + $0x8] sm:$0xff] }
 0xaf9   :  { %2052 = vmatmul.mubr.msk.f32.vlgmr.msra.gmra.mrb[14].mxu0 %vm41_vm0, %v1486_v2 }
 0xafa   :  { %2111 = vmatpush3.bf16.msra.mxu0 %v2108_v32  ;;  %v1838_v32 = vsub.s32 7, %v2303_v11 }
 0xafb   :  { %2113 = vmatprep.subr.bf16.mxu0 %v2112_v17 }
 0xafe   :  { %2115 = vmatpush3.bf16.msra.mxu0 %v2112_v17 }
 0xaff   :  { %2117 = vmatprep.subr.bf16.mxu0 %v2116_v35 }
 0xb02   :  { %2119 = vmatpush3.bf16.msra.mxu0 %v2116_v35  ;;  %v1839_v35 = vrot.slane %v2313_v13, %v1838_v32 }
 0xb03   :  { %2121 = vmatprep.subr.bf16.mxu0 %v2120_v53 }
 0xb06   :  { %2123 = vmatpush3.bf16.msra.mxu0 %v2120_v53 }
 0xbcc   :  { %v2053_v60 = vpop.f32.mrb[14].mxu0 }
 0xbcd   :  { %v1585_v61 = vadd.f32 %v2053_v60, %v1490_v59  ;;  %v1579_v62 = vpop.f32.mrb[15].mxu0  ;;  %v1718_v60 = vsub.s32 3, %v2303_v11 }
 0xbce   :  { %v1580_v63 = vadd.f32 %v1579_v62, %v1490_v59 }
 0xbcf   :  { %v1589_v4 = vadd.f32 %v1585_v61, %v2297_v8  ;;  %v1719_v61 = vrot.slane %v2313_v13, %v1718_v60 }
 0xbd0   :  { %v1588_v7 = vadd.f32 %v1580_v63, %v2288_v6  ;;  %v21_v6 = vld [vmem:[%s2523_s1 + $0x8] sm:$0xff] }
 0xbd1   :  { %v1593_v10 = vsel %vm41_vm0, %v1589_v4, 0.0  ;;  %v2100_v26 = vpack.c.bf16 %v23_v25, %v21_v6 }
 0xbd2   :  { %1594 = vadd.xlane.f32.xlu1 %v1593_v10  ;;  %v1590_v12 = vsel %vm41_vm0, %v1588_v7, 0.0 }
 0xbd3   :  { %1591 = vadd.xlane.f32.xlu0 %v1590_v12  ;;  %2101 = vmatprep.subr.bf16.mxu1 %v2100_v26 }
 0xbd4   :  { %2103 = vmatpush3.bf16.msra.mxu1 %v2100_v26 }
 0xbd5   :  { %2105 = vmatprep.subr.bf16.mxu1 %v2104_v28 }
 0xbd8   :  { %2107 = vmatpush3.bf16.msra.mxu1 %v2104_v28 }
 0xc5f   :  { %v1595_v14 = vpop.xlane.xlu1 %1594 }
 0xc60   :  { %v1598_v15 = vmul.f32 0.03125, %v1595_v14  ;;  %v1592_v16 = vpop.xlane.xlu0 %1591 }
 0xc61   :  { %v1597_v19 = vmul.f32 0.03125, %v1592_v16 }
 0xc62   :  { %v1600_v20 = vsub.f32 %v1589_v4, %v1598_v15 }
 0xc63   :  { %v1599_v21 = vsub.f32 %v1588_v7, %v1597_v19 }
 0xc64   :  { %v1602_v24 = vmul.f32 %v1600_v20, %v1600_v20 }
 0xc65   :  { %v1601_v22 = vmul.f32 %v1599_v21, %v1599_v21 }
 0xc66   :  { %v1606_v8 = vsel %vm41_vm0, %v1602_v24, 0.0 }
 0xc67   :  { %v1603_v23 = vsel %vm41_vm0, %v1601_v22, 0.0 }
 0xc68   :  { %1604 = vadd.xlane.f32.xlu0 %v1603_v23 }
 0xc6c   :  { %1607 = vadd.xlane.f32.xlu0 %v1606_v8 }
 0xcf5   :  { %v1605_v37 = vpop.xlane.xlu0 %1604 }
 0xcf6   :  { %v1609_v38 = vmul.f32 0.03125, %v1605_v37 }
 0xcf8   :  { %v1611_v39 = vadd.f32 1e-05, %v1609_v38 }
 0xcf9   :  { %v1608_v40 = vpop.xlane.xlu0 %1607 }
 0xcfa   :  { %2185 = vrsqrt.f32 %v1611_v39  ;;  %v1610_v41 = vmul.f32 0.03125, %v1608_v40 }
 0xcfc   :  { %v1612_v42 = vadd.f32 1e-05, %v1610_v41 }
 0xcfe   :  { %2187 = vrsqrt.f32 %v1612_v42 }
 0xd04   :  { %v2186_v45 = vpop.eup %2185 }
 0xd05   :  { %v1615_v0 = vmul.f32 %v2186_v45, %v1599_v21 }
 0xd07   :  { %v1621_v3 = vmul.f32 %v1620_v44, %v1615_v0 }
 0xd08   :  { %v2188_v46 = vpop.eup %2187 }
 0xd09   :  { %v1616_v47 = vmul.f32 %v2188_v46, %v1600_v20  ;;  %v1627_v48 = vadd.f32 %v1626_v1, %v1621_v3 }
 0xd0b   :  { %v1622_v49 = vmul.f32 %v1620_v44, %v1616_v47  ;;  %2062 = vmatprep.mubr.msk.f32.mxu1 %vm41_vm0, %v1627_v48 }
 0xd0d   :  { %v1628_v50 = vadd.f32 %v1626_v1, %v1622_v49 }
 0xd0f   :  { %2063 = vmatmul.mubr.msk.f32.vlgmr.msra.gmra.mrb[20].mxu1 %vm41_vm0, %v1628_v50 }
 0xde2   :  { %v2064_v56 = vpop.f32.mrb[20].mxu1 }
 0xde3   :  { %v1711_v57 = vadd.f32 %v2064_v56, %v1632_v55  ;;  %v1705_v58 = vpop.f32.mrb[21].mxu1 }
 0xde4   :  { %v1706_v2 = vadd.f32 %v1705_v58, %v1632_v55 }
 0xde5   :  { %v1715_v59 = vmax.f32 %v1711_v57, 0.0 }
 0xde6   :  { %v1714_v5 = vmax.f32 %v1706_v2, 0.0 }
 0xde8   :  { %2081 = vmatprep.mubr.msk.f32.mxu0 %vm1720_vm6, %v1714_v5 }
 0xde9   :  { %2082 = vmatmul.mubr.msk.f32.vlgmr.msra.gmra.mrb[16].mxu0 %vm1720_vm6, %v1715_v59 }
 0xebc   :  { %v2083_v62 = vpop.f32.mrb[16].mxu0 }
 0xebd   :  { %v1799_v63 = vadd.f32 %v2083_v62, %v1719_v61  ;;  %v1793_v4 = vpop.f32.mrb[17].mxu0 }
 0xebe   :  { %v1794_v7 = vadd.f32 %v1793_v4, %v1719_v61 }
 0xebf   :  { %v1803_v10 = vadd.f32 %v1799_v63, %v1628_v50 }
 0xec0   :  { %v1802_v12 = vadd.f32 %v1794_v7, %v1627_v48 }
 0xec1   :  { %v1807_v14 = vsel %vm41_vm0, %v1803_v10, 0.0 }
 0xec2   :  { %1808 = vadd.xlane.f32.xlu0 %v1807_v14  ;;  %v1804_v15 = vsel %vm41_vm0, %v1802_v12, 0.0 }
 0xec3   :  { %1805 = vadd.xlane.f32.xlu1 %v1804_v15 }
 0xf4f   :  { %v1809_v16 = vpop.xlane.xlu0 %1808 }
 0xf50   :  { %v1811_v19 = vmul.f32 0.03125, %v1809_v16  ;;  %v1806_v20 = vpop.xlane.xlu1 %1805 }
 0xf51   :  { %v1810_v21 = vmul.f32 0.03125, %v1806_v20 }
 0xf52   :  { %v1813_v22 = vsub.f32 %v1803_v10, %v1811_v19 }
 0xf53   :  { %v1812_v23 = vsub.f32 %v1802_v12, %v1810_v21 }
 0xf54   :  { %v1815_v24 = vmul.f32 %v1813_v22, %v1813_v22 }
 0xf55   :  { %v1814_v8 = vmul.f32 %v1812_v23, %v1812_v23 }
 0xf56   :  { %v1819_v6 = vsel %vm41_vm0, %v1815_v24, 0.0 }
 0xf57   :  { %1820 = vadd.xlane.f32.xlu0 %v1819_v6  ;;  %v1816_v25 = vsel %vm41_vm0, %v1814_v8, 0.0 }
 0xf58   :  { %1817 = vadd.xlane.f32.xlu1 %v1816_v25 }
 0xfe4   :  { %v1821_v26 = vpop.xlane.xlu0 %1820 }
 0xfe5   :  { %v1823_v9 = vmul.f32 0.03125, %v1821_v26  ;;  %v1818_v27 = vpop.xlane.xlu1 %1817 }
 0xfe6   :  { %v1822_v28 = vmul.f32 0.03125, %v1818_v27 }
 0xfe7   :  { %v1825_v29 = vadd.f32 1e-05, %v1823_v9 }
 0xfe8   :  { %v1824_v30 = vadd.f32 1e-05, %v1822_v28 }
 0xfe9   :  { %2189 = vrsqrt.f32 %v1825_v29 }
 0xfea   :  { %2191 = vrsqrt.f32 %v1824_v30 }
 0xff3   :  { %v2190_v17 = vpop.eup %2189 }
 0xff4   :  { %v2192_v36 = vpop.eup %2191  ;;  %v1829_v33 = vmul.f32 %v2190_v17, %v1813_v22 }
 0xff5   :  { %v1828_v37 = vmul.f32 %v2192_v36, %v1812_v23 }
 0xff6   :  { %v1835_v38 = vmul.f32 %v1833_v34, %v1829_v33 }
 0xff7   :  { %v1834_v39 = vmul.f32 %v1833_v34, %v1828_v37 }
 0xff8   :  { %v1841_v40 = vadd.f32 %v1839_v35, %v1835_v38 }
 0xff9   :  { %v1840_v41 = vadd.f32 %v1839_v35, %v1834_v39 }
 0xffa   :  { %1843 = vst.msk [vmem:[#allocation3 + $0x8] sm:$0xff] %vm41_vm0, %v1841_v40 }
 0xffb   :  { %1842 = vst.msk [vmem:[#allocation3] sm:$0xff] %vm41_vm0, %v1840_v41 }
 0xffc   :  { %2204 = shalt.err (!%p2201_p4)
}
 0xffd   :  { %s2205_s16 = scalar_lea.hbm %s2526_s4, 256 }
 0xffe   :  { %p2206_p5 = scmp.ne.s32.totalorder %s2526_s4, %s2205_s16  ;;  %p2209_p6 = scmp.lt.u32.totalorder %s2205_s16, %s2526_s4 }
0x1000   :  { %p2211_p7 = pnand %p2209_p6, %p2206_p5 }
0x1002   :  { %2214 = shalt.err (!%p2211_p7)
}
0x1003   :  { %s2235_s21 = smov 128  }
0x1004   :  { %1855 = dma.vmem_to_hbm [thread:$0]  %s1850_s11, 256, %s2526_s4, [#allocation4], %s2235_s21, %s2235_s21, %s2230_s12  }
0x1005   :  { %2215 = dma.done.wait [#allocation4], 256  }
0x1006   :  { %2216 = vsyncadd [#allocation4], 4294967040 }
0x1007   :  { %1859 = vsyncpa [#allocation4], 1 }

</bundles_post_ra>
